<compile_context>
chip_gen: v7x
topology: tpu7x:2x2x1
jax: 0.10.0
libtpu: 0.0.40
codegen_flags: <defaults>
</compile_context>

<pallas_src>
import jax
import jax.numpy as jnp
from jax.experimental import pallas as pl
from jax.experimental.pallas import tpu as pltpu


def _fused_kernel(x0_ref, x1_ref, w_ref, b_ref, o_ref):
    # Elementwise path (VPU): a3 == 2*(relu(x0) + 2*relu(x1)); the factor 2 is
    # already folded into w_ref, so only s = r0 + 2*r1 is computed here.
    r0 = jnp.maximum(x0_ref[...], 0.0)
    r1 = jnp.maximum(x1_ref[...], 0.0)
    s = r0 + 2.0 * r1
    # Linear (MXU) + bias broadcast; direct (tm, out_features) store.
    mm = jnp.dot(s, w_ref[...], preferred_element_type=jnp.float32)
    o_ref[...] = (mm + b_ref[...]).astype(o_ref.dtype)


def prepare_linear_params(weight, bias):
    """One-time preprocessing (hoisted out of the per-call path).

    weight: (out_features, in_features)  [torch layout]
    bias:   (out_features,)

    Returns:
      w_folded: (in_features, out_features) = 2 * weight.T
      b_row:    (1, out_features)
    """
    w_folded = (2.0 * weight.T).astype(weight.dtype)
    b_row = bias.reshape(1, -1)
    return w_folded, b_row


def sample_module1_forward(x0, x1, w_folded, b_row, tm=4096):
    """x0, x1: (B, in_features); w_folded/b_row from prepare_linear_params.
    Returns (B, out_features)."""
    B, in_features = x0.shape
    out_features = w_folded.shape[1]

    # Tile sizing: take the whole batch in one block when it fits the default
    # tile; otherwise use large tiles (multiple of 8) so per-step overhead is
    # amortized and HBM stays saturated.
    if B <= tm:
        tm = B
    grid = (pl.cdiv(B, tm),)

    itemsize = jnp.dtype(x0.dtype).itemsize
    cost = pl.CostEstimate(
        flops=2 * B * in_features * out_features + 3 * B * in_features,
        transcendentals=0,
        bytes_accessed=(2 * B * in_features            # x0, x1 reads
                        + in_features * out_features   # weight read
                        + out_features                 # bias read
                        + B * out_features) * itemsize,  # output write
    )

    out = pl.pallas_call(
        _fused_kernel,
        out_shape=jax.ShapeDtypeStruct((B, out_features), x0.dtype),
        grid=grid,
        in_specs=[
            pl.BlockSpec((tm, in_features), lambda i: (i, 0)),            # x0 tile
            pl.BlockSpec((tm, in_features), lambda i: (i, 0)),            # x1 tile
            pl.BlockSpec((in_features, out_features), lambda i: (0, 0)),  # weight (resident)
            pl.BlockSpec((1, out_features), lambda i: (0, 0)),            # bias (resident)
        ],
        out_specs=pl.BlockSpec((tm, out_features), lambda i: (i, 0)),
        compiler_params=pltpu.CompilerParams(
            dimension_semantics=("parallel",),  # batch axis: megacore/dual-TC friendly
        ),
        cost_estimate=cost,
    )(x0, x1, w_folded, b_row)

    return out


def _reference(x0, x1, weight, bias):
    # Direct transcription of the PyTorch forward (no algebraic simplification).
    r0 = jnp.maximum(x0, 0.0)
    r1 = jnp.maximum(x1, 0.0)
    a0 = r0 + r1
    a1 = a0 + r1
    a2 = r1 + a0
    a3 = a1 + a2
    return a3 @ weight.T + bias


if __name__ == "__main__":
    # Small shapes consistent with the module: x: (batch, in_features).
    batch, in_features, out_features = 256, 32, 16

    key = jax.random.PRNGKey(0)
    k0, k1, kw, kb = jax.random.split(key, 4)
    x0 = jax.random.normal(k0, (batch, in_features), dtype=jnp.float32)
    x1 = jax.random.normal(k1, (batch, in_features), dtype=jnp.float32)
    # Deterministic synthetic "Linear" params (torch-default-like uniform scale).
    bound = 1.0 / (in_features ** 0.5)
    weight = jax.random.uniform(kw, (out_features, in_features),
                                minval=-bound, maxval=bound, dtype=jnp.float32)
    bias = jax.random.uniform(kb, (out_features,),
                              minval=-bound, maxval=bound, dtype=jnp.float32)

    # One-time parameter preparation (transpose + fold-in the x2).
    w_folded, b_row = prepare_linear_params(weight, bias)

    out = sample_module1_forward(x0, x1, w_folded, b_row)
    out = jax.block_until_ready(out)

    ref = _reference(x0, x1, weight, bias)
    assert out.shape == (batch, out_features)
    assert jnp.allclose(out, ref, atol=1e-4, rtol=1e-5), "mismatch vs reference"

    print("KERNEL_OK")
</pallas_src>

<mosaic_0001>
module attributes {stable_mosaic.version = 11 : i64} {
  func.func @_fused_kernel(%arg0: i32, %arg1: memref<256x32xf32, #tpu.memory_space<vmem>>, %arg2: memref<256x32xf32, #tpu.memory_space<vmem>>, %arg3: memref<32x16xf32, #tpu.memory_space<vmem>>, %arg4: memref<1x16xf32, #tpu.memory_space<vmem>>, %arg5: memref<256x16xf32, #tpu.memory_space<vmem>>) attributes {dimension_semantics = [#tpu.dimension_semantics<parallel>], iteration_bounds = array<i64: 1>, scalar_prefetch = 0 : i64, scratch_operands = 0 : i64, tpu.core_type = #tpu.core_type<tc>, window_params = [{transform_indices = @transform_0, window_bounds = array<i64: 256, 32>}, {transform_indices = @transform_1, window_bounds = array<i64: 256, 32>}, {pipeline_mode = #tpu.pipeline_mode<synchronous>, transform_indices = @transform_2, window_bounds = array<i64: 32, 16>}, {pipeline_mode = #tpu.pipeline_mode<synchronous>, transform_indices = @transform_3, window_bounds = array<i64: 1, 16>}, {transform_indices = @transform_4, window_bounds = array<i64: 256, 16>}]} {
    %c0 = arith.constant 0 : index
    %c0_0 = arith.constant 0 : index
    %0 = vector.load %arg1[%c0, %c0_0] : memref<256x32xf32, #tpu.memory_space<vmem>>, vector<256x32xf32>
    %cst = arith.constant 0.000000e+00 : f32
    %1 = vector.broadcast %cst : f32 to vector<256x32xf32>
    %2 = arith.maximumf %0, %1 : vector<256x32xf32>
    %c0_1 = arith.constant 0 : index
    %c0_2 = arith.constant 0 : index
    %3 = vector.load %arg2[%c0_1, %c0_2] : memref<256x32xf32, #tpu.memory_space<vmem>>, vector<256x32xf32>
    %cst_3 = arith.constant 0.000000e+00 : f32
    %4 = vector.broadcast %cst_3 : f32 to vector<256x32xf32>
    %5 = arith.maximumf %3, %4 : vector<256x32xf32>
    %cst_4 = arith.constant 2.000000e+00 : f32
    %6 = vector.broadcast %cst_4 : f32 to vector<256x32xf32>
    %7 = arith.mulf %6, %5 : vector<256x32xf32>
    %8 = arith.addf %2, %7 : vector<256x32xf32>
    %c0_5 = arith.constant 0 : index
    %c0_6 = arith.constant 0 : index
    %9 = vector.load %arg3[%c0_5, %c0_6] : memref<32x16xf32, #tpu.memory_space<vmem>>, vector<32x16xf32>
    %cst_7 = arith.constant dense<0.000000e+00> : vector<256x16xf32>
    %10 = tpu.matmul %8, %9, %cst_7 {dimension_numbers = #tpu.dot_dimension_numbers<[1], [0], [0], [1], [0, 0, 1, 1], [], []>} : vector<256x32xf32>, vector<32x16xf32>, vector<256x16xf32> -> vector<256x16xf32>
    %c0_8 = arith.constant 0 : index
    %c0_9 = arith.constant 0 : index
    %11 = vector.load %arg4[%c0_8, %c0_9] : memref<1x16xf32, #tpu.memory_space<vmem>>, vector<1x16xf32>
    %12 = vector.broadcast %11 : vector<1x16xf32> to vector<256x16xf32>
    %13 = arith.addf %10, %12 : vector<256x16xf32>
    %c0_10 = arith.constant 0 : index
    %c0_11 = arith.constant 0 : index
    %14 = vector.load %arg5[%c0_10, %c0_11] : memref<256x16xf32, #tpu.memory_space<vmem>>, vector<256x16xf32>
    tpu.vector_store %arg5[%c0_10, %c0_11], %13 {strides = array<i32>} : memref<256x16xf32, #tpu.memory_space<vmem>>, vector<256x16xf32>,
    return
  }
  func.func @transform_0(%arg0: i32) -> (i32, i32) {
    %c0_i32 = arith.constant 0 : i32
    %c0_i32_0 = arith.constant 0 : i32
    return %arg0, %c0_i32 : i32, i32
  }
  func.func @transform_1(%arg0: i32) -> (i32, i32) {
    %c0_i32 = arith.constant 0 : i32
    %c0_i32_0 = arith.constant 0 : i32
    return %arg0, %c0_i32 : i32, i32
  }
  func.func @transform_2(%arg0: i32) -> (i32, i32) {
    %c0_i32 = arith.constant 0 : i32
    %c0_i32_0 = arith.constant 0 : i32
    %c0_i32_1 = arith.constant 0 : i32
    return %c0_i32, %c0_i32_0 : i32, i32
  }
  func.func @transform_3(%arg0: i32) -> (i32, i32) {
    %c0_i32 = arith.constant 0 : i32
    %c0_i32_0 = arith.constant 0 : i32
    %c0_i32_1 = arith.constant 0 : i32
    return %c0_i32, %c0_i32_0 : i32, i32
  }
  func.func @transform_4(%arg0: i32) -> (i32, i32) {
    %c0_i32 = arith.constant 0 : i32
    %c0_i32_0 = arith.constant 0 : i32
    return %arg0, %c0_i32 : i32, i32
  }
}

</mosaic_0001>

<bundles_post_ra>
// kernel: tpu_custom_call.1
= control target key start
LH: loop header
LB: loop body
LE: loop exit
PB: predicated region body
PF: predicated region fallthrough
CT: control target
= control target key end

     0   :  { %vm220_vm0 = vcmask 261120   ;;  %vm542_vm1 = vcmask 130048   ;;  %s1142_s2 = inlined_call_operand.vmem [shape: f32[32,16], index: 2, kind: input, shape index: {}]   ;;  %s1143_s0 = inlined_call_operand.vmem [shape: f32[256,32], index: 0, kind: input, shape index: {}]   ;;  %s1144_s1 = inlined_call_operand.vmem [shape: f32[256,32], index: 1, kind: input, shape index: {}]   ;;  %s1145_s3 = inlined_call_operand.vmem [shape: f32[1,16], index: 3, kind: input, shape index: {}]   ;;  %s1146_s4 = inlined_call_operand.vmem [shape: f32[256,16], index: 4, kind: output, shape index: {}]  }
   0x1   :  { %v209_v0 = vld [vmem:[%s1142_s2] sm:$0xff]  ;;  %v210_v1 = vld [vmem:[%s1142_s2 + $0x8] sm:$0xff]  ;;  %v211_v2 = vld [vmem:[%s1142_s2 + $0x10] sm:$0xff] }
   0x2   :  { %v704_v3 = vpack.c.bf16 %v210_v1, %v209_v0  ;;  %v212_v4 = vld [vmem:[%s1142_s2 + $0x18] sm:$0xff]  ;;  %v17_v5 = vld [vmem:[%s1143_s0] sm:$0xff]  ;;  %v18_v12 = vld [vmem:[%s1143_s0 + $0x8] sm:$0xff] }
   0x3   :  { %v81_v6 = vld [vmem:[%s1144_s1] sm:$0xff]  ;;  %v708_v7 = vpack.c.bf16 %v212_v4, %v211_v2  ;;  %v49_v8 = vmax.f32 %v17_v5, 0.0  ;;  %v50_v15 = vmax.f32 %v18_v12, 0.0  ;;  %v82_v16 = vld [vmem:[%s1144_s1 + $0x8] sm:$0xff]  ;;  %v19_v23 = vld [vmem:[%s1143_s0 + $0x10] sm:$0xff] }
   0x4   :  { %v113_v9 = vmax.f32 %v81_v6, 0.0  ;;  %v33_v10 = vld [vmem:[%s1143_s0 + $0x80] sm:$0xff]  ;;  %705 = vmatprep.subr.bf16.mxu0 %v704_v3  ;;  %712 = vmatprep.subr.bf16.mxu1 %v704_v3  ;;  %v34_v17 = vld [vmem:[%s1143_s0 + $0x88] sm:$0xff]  ;;  %v114_v20 = vmax.f32 %v82_v16, 0.0  ;;  %v83_v24 = vld [vmem:[%s1144_s1 + $0x10] sm:$0xff]  ;;  %v51_v26 = vmax.f32 %v19_v23, 0.0 }
   0x5   :  { %v97_v11 = vld [vmem:[%s1144_s1 + $0x80] sm:$0xff]  ;;  %v65_v13 = vmax.f32 %v33_v10, 0.0  ;;  %v98_v18 = vld [vmem:[%s1144_s1 + $0x88] sm:$0xff]  ;;  %707 = vmatpush3.bf16.msra.mxu0 %v704_v3  ;;  %714 = vmatpush3.bf16.msra.mxu1 %v704_v3  ;;  %v66_v21 = vmax.f32 %v34_v17, 0.0  ;;  %v115_v27 = vmax.f32 %v83_v24, 0.0  ;;  %v35_v28 = vld [vmem:[%s1143_s0 + $0x90] sm:$0xff] }
   0x6   :  { %v129_v14 = vmax.f32 %v97_v11, 0.0  ;;  %v145_v19 = vmul.f32 2.0, %v113_v9  ;;  %v130_v22 = vmax.f32 %v98_v18, 0.0  ;;  %709 = vmatprep.subr.bf16.mxu0 %v708_v7  ;;  %713 = vmatprep.subr.bf16.mxu1 %v708_v7  ;;  %v99_v29 = vld [vmem:[%s1144_s1 + $0x90] sm:$0xff]  ;;  %v20_v30 = vld [vmem:[%s1143_s0 + $0x18] sm:$0xff]  ;;  %v146_v32 = vmul.f32 2.0, %v114_v20 }
   0x7   :  { %v67_v34 = vmax.f32 %v35_v28, 0.0  ;;  %v84_v35 = vld [vmem:[%s1144_s1 + $0x18] sm:$0xff]  ;;  %v147_v39 = vmul.f32 2.0, %v115_v27  ;;  %v131_v40 = vmax.f32 %v99_v29, 0.0  ;;  %v52_v41 = vmax.f32 %v20_v30, 0.0  ;;  %v21_v42 = vld [vmem:[%s1143_s0 + $0x20] sm:$0xff] }
   0x8   :  { %v161_v25 = vmul.f32 2.0, %v129_v14  ;;  %v177_v31 = vadd.f32 %v145_v19, %v49_v8  ;;  %v162_v33 = vmul.f32 2.0, %v130_v22  ;;  %v36_v36 = vld [vmem:[%s1143_s0 + $0x98] sm:$0xff]  ;;  %v85_v43 = vld [vmem:[%s1144_s1 + $0x20] sm:$0xff]  ;;  %v178_v45 = vadd.f32 %v146_v32, %v50_v15  ;;  %v22_v50 = vld [vmem:[%s1143_s0 + $0x28] sm:$0xff] }
   0x9   :  { %v100_v37 = vld [vmem:[%s1144_s1 + $0x98] sm:$0xff]  ;;  %v37_v44 = vld [vmem:[%s1143_s0 + $0xa0] sm:$0xff]  ;;  %711 = vmatpush3.bf16.msra.mxu0 %v708_v7  ;;  %715 = vmatpush3.bf16.msra.mxu1 %v708_v7  ;;  %v116_v47 = vmax.f32 %v84_v35, 0.0  ;;  %v68_v48 = vmax.f32 %v36_v36, 0.0  ;;  %v86_v51 = vld [vmem:[%s1144_s1 + $0x28] sm:$0xff]  ;;  %v179_v52 = vadd.f32 %v147_v39, %v51_v26  ;;  %v163_v53 = vmul.f32 2.0, %v131_v40 }
   0xa   :  { %v193_v38 = vadd.f32 %v161_v25, %v65_v13  ;;  %v194_v46 = vadd.f32 %v162_v33, %v66_v21  ;;  %v101_v49 = vld [vmem:[%s1144_s1 + $0xa0] sm:$0xff]  ;;  %656 = vmatprep.mubr.msk.f32.mxu0 %vm220_vm0, %v177_v31  ;;  %v132_v54 = vmax.f32 %v100_v37, 0.0  ;;  %v53_v55 = vmax.f32 %v21_v42, 0.0  ;;  %v38_v56 = vld [vmem:[%s1143_s0 + $0xa8] sm:$0xff]  ;;  %v23_v62 = vld [vmem:[%s1143_s0 + $0x30] sm:$0xff] }
   0xb   :  { %v148_v57 = vmul.f32 2.0, %v116_v47  ;;  %v117_v58 = vmax.f32 %v85_v43, 0.0  ;;  %v69_v59 = vmax.f32 %v37_v44, 0.0  ;;  %v133_v60 = vmax.f32 %v101_v49, 0.0  ;;  %v102_v61 = vld [vmem:[%s1144_s1 + $0xa8] sm:$0xff]  ;;  %v87_v3 = vld [vmem:[%s1144_s1 + $0x30] sm:$0xff] }
   0xc   :  { %680 = vmatprep.mubr.msk.f32.mxu1 %vm220_vm0, %v193_v38  ;;  %657 = vmatmul.mubr.msk.f32.vlgmr.msra.gmra.mrb[0].mxu0 %vm220_vm0, %v178_v45  ;;  %v195_v63 = vadd.f32 %v163_v53, %v67_v34  ;;  %v164_v0 = vmul.f32 2.0, %v132_v54  ;;  %v54_v1 = vmax.f32 %v22_v50, 0.0  ;;  %v118_v2 = vmax.f32 %v86_v51, 0.0  ;;  %v39_v4 = vld [vmem:[%s1143_s0 + $0xb0] sm:$0xff]  ;;  %v24_v10 = vld [vmem:[%s1143_s0 + $0x38] sm:$0xff]  ;;  %v25_v22 = vld [vmem:[%s1143_s0 + $0x40] sm:$0xff] }
   0xd   :  { %681 = vmatmul.mubr.msk.f32.vlgmr.msra.gmra.mrb[0].mxu1 %vm220_vm0, %v194_v46  ;;  %659 = vmatprep.mubr.msk.f32.mxu0 %vm220_vm0, %v179_v52  ;;  %v180_v5 = vadd.f32 %v148_v57, %v52_v41  ;;  %v149_v6 = vmul.f32 2.0, %v117_v58  ;;  %v165_v7 = vmul.f32 2.0, %v133_v60  ;;  %v70_v8 = vmax.f32 %v38_v56, 0.0  ;;  %v103_v9 = vld [vmem:[%s1144_s1 + $0xb0] sm:$0xff]  ;;  %v88_v15 = vld [vmem:[%s1144_s1 + $0x38] sm:$0xff]  ;;  %v89_v23 = vld [vmem:[%s1144_s1 + $0x40] sm:$0xff] }
   0xe   :  { %683 = vmatprep.mubr.msk.f32.mxu1 %vm220_vm0, %v195_v63  ;;  %v196_v11 = vadd.f32 %v164_v0, %v68_v48  ;;  %v150_v12 = vmul.f32 2.0, %v118_v2  ;;  %v134_v13 = vmax.f32 %v102_v61, 0.0  ;;  %v55_v14 = vmax.f32 %v23_v62, 0.0  ;;  %v40_v16 = vld [vmem:[%s1143_s0 + $0xb8] sm:$0xff]  ;;  %v41_v28 = vld [vmem:[%s1143_s0 + $0xc0] sm:$0xff]  ;;  %v26_v34 = vld [vmem:[%s1143_s0 + $0x48] sm:$0xff] }
   0xf   :  { %v104_v17 = vld [vmem:[%s1144_s1 + $0xb8] sm:$0xff]  ;;  %v181_v18 = vadd.f32 %v149_v6, %v53_v55  ;;  %v197_v19 = vadd.f32 %v165_v7, %v69_v59  ;;  %v119_v20 = vmax.f32 %v87_v3, 0.0  ;;  %v71_v21 = vmax.f32 %v39_v4, 0.0  ;;  %v105_v33 = vld [vmem:[%s1144_s1 + $0xc0] sm:$0xff]  ;;  %v90_v39 = vld [vmem:[%s1144_s1 + $0x48] sm:$0xff] }
  0x10   :  { %660 = vmatmul.mubr.msk.f32.gmra.mrb[2].mxu0 %vm220_vm0, %v180_v5  ;;  %v182_v24 = vadd.f32 %v150_v12, %v54_v1  ;;  %v166_v25 = vmul.f32 2.0, %v134_v13  ;;  %v135_v26 = vmax.f32 %v103_v9, 0.0  ;;  %v56_v27 = vmax.f32 %v24_v10, 0.0  ;;  %v42_v40 = vld [vmem:[%s1143_s0 + $0xc8] sm:$0xff]  ;;  %v27_v46 = vld [vmem:[%s1143_s0 + $0x50] sm:$0xff]  ;;  %v28_v58 = vld [vmem:[%s1143_s0 + $0x58] sm:$0xff] }
  0x11   :  { %684 = vmatmul.mubr.msk.f32.gmra.mrb[2].mxu1 %vm220_vm0, %v196_v11  ;;  %662 = vmatprep.mubr.msk.f32.mxu0 %vm220_vm0, %v181_v18  ;;  %v151_v29 = vmul.f32 2.0, %v119_v20  ;;  %v120_v30 = vmax.f32 %v88_v15, 0.0  ;;  %v72_v31 = vmax.f32 %v40_v16, 0.0  ;;  %v136_v32 = vmax.f32 %v104_v17, 0.0  ;;  %v106_v45 = vld [vmem:[%s1144_s1 + $0xc8] sm:$0xff]  ;;  %v91_v51 = vld [vmem:[%s1144_s1 + $0x50] sm:$0xff] }
  0x12   :  { %686 = vmatprep.mubr.msk.f32.mxu1 %vm220_vm0, %v197_v19  ;;  %v198_v35 = vadd.f32 %v166_v25, %v70_v8  ;;  %v167_v36 = vmul.f32 2.0, %v135_v26  ;;  %v57_v37 = vmax.f32 %v25_v22, 0.0  ;;  %v121_v38 = vmax.f32 %v89_v23, 0.0  ;;  %v43_v52 = vld [vmem:[%s1143_s0 + $0xd0] sm:$0xff]  ;;  %v92_v59 = vld [vmem:[%s1144_s1 + $0x58] sm:$0xff]  ;;  %v29_v6 = vld [vmem:[%s1143_s0 + $0x60] sm:$0xff] }
  0x13   :  { %v183_v41 = vadd.f32 %v151_v29, %v55_v14  ;;  %v152_v42 = vmul.f32 2.0, %v120_v30  ;;  %v168_v43 = vmul.f32 2.0, %v136_v32  ;;  %v73_v44 = vmax.f32 %v41_v28, 0.0  ;;  %v107_v53 = vld [vmem:[%s1144_s1 + $0xd0] sm:$0xff]  ;;  %v44_v0 = vld [vmem:[%s1143_s0 + $0xd8] sm:$0xff]  ;;  %v93_v11 = vld [vmem:[%s1144_s1 + $0x60] sm:$0xff] }
  0x14   :  { %663 = vmatmul.mubr.msk.f32.gmra.mrb[4].mxu0 %vm220_vm0, %v182_v24  ;;  %v199_v47 = vadd.f32 %v167_v36, %v71_v21  ;;  %v153_v48 = vmul.f32 2.0, %v121_v38  ;;  %v137_v49 = vmax.f32 %v105_v33, 0.0  ;;  %v58_v50 = vmax.f32 %v26_v34, 0.0  ;;  %v108_v5 = vld [vmem:[%s1144_s1 + $0xd8] sm:$0xff]  ;;  %v45_v12 = vld [vmem:[%s1143_s0 + $0xe0] sm:$0xff]  ;;  %v30_v18 = vld [vmem:[%s1143_s0 + $0x68] sm:$0xff] }
  0x15   :  { %687 = vmatmul.mubr.msk.f32.gmra.mrb[4].mxu1 %vm220_vm0, %v198_v35  ;;  %665 = vmatprep.mubr.msk.f32.mxu0 %vm220_vm0, %v183_v41  ;;  %v184_v54 = vadd.f32 %v152_v42, %v56_v27  ;;  %v200_v55 = vadd.f32 %v168_v43, %v72_v31  ;;  %v122_v56 = vmax.f32 %v90_v39, 0.0  ;;  %v74_v57 = vmax.f32 %v42_v40, 0.0  ;;  %v109_v17 = vld [vmem:[%s1144_s1 + $0xe0] sm:$0xff]  ;;  %v94_v23 = vld [vmem:[%s1144_s1 + $0x68] sm:$0xff]  ;;  %v31_v30 = vld [vmem:[%s1143_s0 + $0x70] sm:$0xff] }
  0x16   :  { %689 = vmatprep.mubr.msk.f32.mxu1 %vm220_vm0, %v199_v47  ;;  %v185_v60 = vadd.f32 %v153_v48, %v57_v37  ;;  %v169_v61 = vmul.f32 2.0, %v137_v49  ;;  %v138_v62 = vmax.f32 %v106_v45, 0.0  ;;  %v59_v63 = vmax.f32 %v27_v46, 0.0  ;;  %v46_v24 = vld [vmem:[%s1143_s0 + $0xe8] sm:$0xff]  ;;  %v95_v31 = vld [vmem:[%s1144_s1 + $0x70] sm:$0xff]  ;;  %v32_v46 = vld [vmem:[%s1143_s0 + $0x78] sm:$0xff] }
  0x17   :  { %v154_v1 = vmul.f32 2.0, %v122_v56  ;;  %v123_v2 = vmax.f32 %v91_v51, 0.0  ;;  %v75_v3 = vmax.f32 %v43_v52, 0.0  ;;  %v139_v4 = vmax.f32 %v107_v53, 0.0  ;;  %v110_v25 = vld [vmem:[%s1144_s1 + $0xe8] sm:$0xff]  ;;  %v47_v40 = vld [vmem:[%s1143_s0 + $0xf0] sm:$0xff] }
  0x18   :  { %666 = vmatmul.mubr.msk.f32.gmra.mrb[6].mxu0 %vm220_vm0, %v184_v54  ;;  %v201_v7 = vadd.f32 %v169_v61, %v73_v44  ;;  %v170_v8 = vmul.f32 2.0, %v138_v62  ;;  %v60_v9 = vmax.f32 %v28_v58, 0.0  ;;  %v124_v10 = vmax.f32 %v92_v59, 0.0  ;;  %v111_v41 = vld [vmem:[%s1144_s1 + $0xf0] sm:$0xff]  ;;  %v96_v47 = vld [vmem:[%s1144_s1 + $0x78] sm:$0xff] }
  0x19   :  { %690 = vmatmul.mubr.msk.f32.gmra.mrb[6].mxu1 %vm220_vm0, %v200_v55  ;;  %668 = vmatprep.mubr.msk.f32.mxu0 %vm220_vm0, %v185_v60  ;;  %v186_v13 = vadd.f32 %v154_v1, %v58_v50  ;;  %v155_v14 = vmul.f32 2.0, %v123_v2  ;;  %v171_v15 = vmul.f32 2.0, %v139_v4  ;;  %v76_v16 = vmax.f32 %v44_v0, 0.0  ;;  %v48_v51 = vld [vmem:[%s1143_s0 + $0xf8] sm:$0xff] }
  0x1a   :  { %692 = vmatprep.mubr.msk.f32.mxu1 %vm220_vm0, %v201_v7  ;;  %v202_v19 = vadd.f32 %v170_v8, %v74_v57  ;;  %v156_v20 = vmul.f32 2.0, %v124_v10  ;;  %v140_v21 = vmax.f32 %v108_v5, 0.0  ;;  %v61_v22 = vmax.f32 %v29_v6, 0.0  ;;  %v112_v52 = vld [vmem:[%s1144_s1 + $0xf8] sm:$0xff]  ;;  %v980_v6 = vld [vmem:[%s1145_s3] ss:$0 sm:$0xff] }
  0x1b   :  { %v187_v26 = vadd.f32 %v155_v14, %v59_v63  ;;  %v203_v27 = vadd.f32 %v171_v15, %v75_v3  ;;  %v125_v28 = vmax.f32 %v93_v11, 0.0  ;;  %v77_v29 = vmax.f32 %v45_v12, 0.0 }
  0x1c   :  { %669 = vmatmul.mubr.msk.f32.gmra.mrb[8].mxu0 %vm220_vm0, %v186_v13  ;;  %v188_v32 = vadd.f32 %v156_v20, %v60_v9  ;;  %v172_v33 = vmul.f32 2.0, %v140_v21  ;;  %v141_v34 = vmax.f32 %v109_v17, 0.0  ;;  %v62_v35 = vmax.f32 %v30_v18, 0.0 }
  0x1d   :  { %693 = vmatmul.mubr.msk.f32.gmra.mrb[8].mxu1 %vm220_vm0, %v202_v19  ;;  %671 = vmatprep.mubr.msk.f32.mxu0 %vm220_vm0, %v187_v26  ;;  %v157_v36 = vmul.f32 2.0, %v125_v28  ;;  %v126_v37 = vmax.f32 %v94_v23, 0.0  ;;  %v78_v38 = vmax.f32 %v46_v24, 0.0  ;;  %v142_v39 = vmax.f32 %v110_v25, 0.0 }
  0x1e   :  { %695 = vmatprep.mubr.msk.f32.mxu1 %vm220_vm0, %v203_v27  ;;  %v204_v42 = vadd.f32 %v172_v33, %v76_v16  ;;  %v173_v43 = vmul.f32 2.0, %v141_v34  ;;  %v63_v44 = vmax.f32 %v31_v30, 0.0  ;;  %v127_v45 = vmax.f32 %v95_v31, 0.0 }
  0x1f   :  { %v189_v48 = vadd.f32 %v157_v36, %v61_v22  ;;  %v158_v49 = vmul.f32 2.0, %v126_v37  ;;  %v174_v50 = vmul.f32 2.0, %v142_v39  ;;  %v79_v55 = vmax.f32 %v47_v40, 0.0 }
  0x20   :  { %672 = vmatmul.mubr.msk.f32.gmra.mrb[10].mxu0 %vm220_vm0, %v188_v32  ;;  %v205_v53 = vadd.f32 %v173_v43, %v77_v29  ;;  %v159_v54 = vmul.f32 2.0, %v127_v45  ;;  %v143_v56 = vmax.f32 %v111_v41, 0.0  ;;  %v64_v59 = vmax.f32 %v32_v46, 0.0 }
  0x21   :  { %696 = vmatmul.mubr.msk.f32.gmra.mrb[10].mxu1 %vm220_vm0, %v204_v42  ;;  %674 = vmatprep.mubr.msk.f32.mxu0 %vm220_vm0, %v189_v48  ;;  %v190_v57 = vadd.f32 %v158_v49, %v62_v35  ;;  %v206_v58 = vadd.f32 %v174_v50, %v78_v38  ;;  %v128_v60 = vmax.f32 %v96_v47, 0.0  ;;  %v80_v63 = vmax.f32 %v48_v51, 0.0 }
  0x22   :  { %698 = vmatprep.mubr.msk.f32.mxu1 %vm220_vm0, %v205_v53  ;;  %v191_v61 = vadd.f32 %v159_v54, %v63_v44  ;;  %v175_v62 = vmul.f32 2.0, %v143_v56  ;;  %v144_v0 = vmax.f32 %v112_v52, 0.0 }
  0x23   :  { %v160_v1 = vmul.f32 2.0, %v128_v60 }
  0x24   :  { %675 = vmatmul.mubr.msk.f32.gmra.mrb[12].mxu0 %vm220_vm0, %v190_v57  ;;  %v207_v2 = vadd.f32 %v175_v62, %v79_v55  ;;  %v176_v3 = vmul.f32 2.0, %v144_v0 }
  0x25   :  { %699 = vmatmul.mubr.msk.f32.gmra.mrb[12].mxu1 %vm220_vm0, %v206_v58  ;;  %677 = vmatprep.mubr.msk.f32.mxu0 %vm220_vm0, %v191_v61  ;;  %v192_v4 = vadd.f32 %v160_v1, %v64_v59 }
  0x26   :  { %701 = vmatprep.mubr.msk.f32.mxu1 %vm220_vm0, %v207_v2  ;;  %v208_v5 = vadd.f32 %v176_v3, %v80_v63 }
  0x28   :  { %678 = vmatmul.mubr.msk.f32.gmra.mrb[14].mxu0 %vm220_vm0, %v192_v4 }
  0x29   :  { %702 = vmatmul.mubr.msk.f32.gmra.mrb[14].mxu1 %vm220_vm0, %v208_v5 }
  0xdf   :  { %v658_v7 = vpop.f32.mrb[0].mxu0 }
  0xe0   :  { %v682_v8 = vpop.f32.mrb[0].mxu1  ;;  %v389_v9 = vadd.f32 %v658_v7, %v980_v6  ;;  %v383_v11 = vpop.f32.mrb[1].mxu0 }
  0xe1   :  { %v469_v10 = vadd.f32 %v682_v8, %v980_v6  ;;  %v463_v12 = vpop.f32.mrb[1].mxu1  ;;  %v384_v13 = vadd.f32 %v980_v6, %v383_v11 }
  0xe2   :  { %v464_v14 = vadd.f32 %v980_v6, %v463_v12  ;;  %544 = vst.msk [vmem:[%s1146_s4 + $0x8] sm:$0xff] %vm542_vm1, %v389_v9 }
  0xe3   :  { %560 = vst.msk [vmem:[%s1146_s4 + $0x88] sm:$0xff] %vm542_vm1, %v469_v10  ;;  %543 = vst.msk [vmem:[%s1146_s4] sm:$0xff] %vm542_vm1, %v384_v13  ;;  %v661_v15 = vpop.f32.mrb[2].mxu0 }
  0xe4   :  { %559 = vst.msk [vmem:[%s1146_s4 + $0x80] sm:$0xff] %vm542_vm1, %v464_v14  ;;  %v685_v16 = vpop.f32.mrb[2].mxu1  ;;  %v399_v17 = vadd.f32 %v661_v15, %v980_v6  ;;  %v393_v19 = vpop.f32.mrb[3].mxu0 }
  0xe5   :  { %v479_v18 = vadd.f32 %v685_v16, %v980_v6  ;;  %v473_v20 = vpop.f32.mrb[3].mxu1  ;;  %v394_v21 = vadd.f32 %v980_v6, %v393_v19 }
  0xe6   :  { %v474_v22 = vadd.f32 %v980_v6, %v473_v20  ;;  %546 = vst.msk [vmem:[%s1146_s4 + $0x18] sm:$0xff] %vm542_vm1, %v399_v17 }
  0xe7   :  { %562 = vst.msk [vmem:[%s1146_s4 + $0x98] sm:$0xff] %vm542_vm1, %v479_v18  ;;  %545 = vst.msk [vmem:[%s1146_s4 + $0x10] sm:$0xff] %vm542_vm1, %v394_v21  ;;  %v664_v23 = vpop.f32.mrb[4].mxu0 }
  0xe8   :  { %561 = vst.msk [vmem:[%s1146_s4 + $0x90] sm:$0xff] %vm542_vm1, %v474_v22  ;;  %v688_v24 = vpop.f32.mrb[4].mxu1  ;;  %v409_v25 = vadd.f32 %v664_v23, %v980_v6  ;;  %v403_v27 = vpop.f32.mrb[5].mxu0 }
  0xe9   :  { %v489_v26 = vadd.f32 %v688_v24, %v980_v6  ;;  %v483_v28 = vpop.f32.mrb[5].mxu1  ;;  %v404_v29 = vadd.f32 %v980_v6, %v403_v27 }
  0xea   :  { %v484_v30 = vadd.f32 %v980_v6, %v483_v28  ;;  %548 = vst.msk [vmem:[%s1146_s4 + $0x28] sm:$0xff] %vm542_vm1, %v409_v25 }
  0xeb   :  { %564 = vst.msk [vmem:[%s1146_s4 + $0xa8] sm:$0xff] %vm542_vm1, %v489_v26  ;;  %547 = vst.msk [vmem:[%s1146_s4 + $0x20] sm:$0xff] %vm542_vm1, %v404_v29  ;;  %v667_v31 = vpop.f32.mrb[6].mxu0 }
  0xec   :  { %563 = vst.msk [vmem:[%s1146_s4 + $0xa0] sm:$0xff] %vm542_vm1, %v484_v30  ;;  %v691_v32 = vpop.f32.mrb[6].mxu1  ;;  %v419_v33 = vadd.f32 %v667_v31, %v980_v6  ;;  %v413_v35 = vpop.f32.mrb[7].mxu0 }
  0xed   :  { %v499_v34 = vadd.f32 %v691_v32, %v980_v6  ;;  %v493_v36 = vpop.f32.mrb[7].mxu1  ;;  %v414_v37 = vadd.f32 %v980_v6, %v413_v35 }
  0xee   :  { %v494_v38 = vadd.f32 %v980_v6, %v493_v36  ;;  %550 = vst.msk [vmem:[%s1146_s4 + $0x38] sm:$0xff] %vm542_vm1, %v419_v33 }
  0xef   :  { %566 = vst.msk [vmem:[%s1146_s4 + $0xb8] sm:$0xff] %vm542_vm1, %v499_v34  ;;  %549 = vst.msk [vmem:[%s1146_s4 + $0x30] sm:$0xff] %vm542_vm1, %v414_v37  ;;  %v670_v39 = vpop.f32.mrb[8].mxu0 }
  0xf0   :  { %565 = vst.msk [vmem:[%s1146_s4 + $0xb0] sm:$0xff] %vm542_vm1, %v494_v38  ;;  %v694_v40 = vpop.f32.mrb[8].mxu1  ;;  %v429_v41 = vadd.f32 %v670_v39, %v980_v6  ;;  %v423_v43 = vpop.f32.mrb[9].mxu0 }
  0xf1   :  { %v509_v42 = vadd.f32 %v694_v40, %v980_v6  ;;  %v503_v44 = vpop.f32.mrb[9].mxu1  ;;  %v424_v45 = vadd.f32 %v980_v6, %v423_v43 }
  0xf2   :  { %v504_v46 = vadd.f32 %v980_v6, %v503_v44  ;;  %552 = vst.msk [vmem:[%s1146_s4 + $0x48] sm:$0xff] %vm542_vm1, %v429_v41 }
  0xf3   :  { %568 = vst.msk [vmem:[%s1146_s4 + $0xc8] sm:$0xff] %vm542_vm1, %v509_v42  ;;  %551 = vst.msk [vmem:[%s1146_s4 + $0x40] sm:$0xff] %vm542_vm1, %v424_v45  ;;  %v673_v47 = vpop.f32.mrb[10].mxu0 }
  0xf4   :  { %567 = vst.msk [vmem:[%s1146_s4 + $0xc0] sm:$0xff] %vm542_vm1, %v504_v46  ;;  %v697_v48 = vpop.f32.mrb[10].mxu1  ;;  %v439_v49 = vadd.f32 %v673_v47, %v980_v6  ;;  %v433_v51 = vpop.f32.mrb[11].mxu0 }
  0xf5   :  { %v519_v50 = vadd.f32 %v697_v48, %v980_v6  ;;  %v513_v52 = vpop.f32.mrb[11].mxu1  ;;  %v434_v53 = vadd.f32 %v980_v6, %v433_v51 }
  0xf6   :  { %v514_v54 = vadd.f32 %v980_v6, %v513_v52  ;;  %554 = vst.msk [vmem:[%s1146_s4 + $0x58] sm:$0xff] %vm542_vm1, %v439_v49 }
  0xf7   :  { %570 = vst.msk [vmem:[%s1146_s4 + $0xd8] sm:$0xff] %vm542_vm1, %v519_v50  ;;  %553 = vst.msk [vmem:[%s1146_s4 + $0x50] sm:$0xff] %vm542_vm1, %v434_v53  ;;  %v676_v55 = vpop.f32.mrb[12].mxu0 }
  0xf8   :  { %569 = vst.msk [vmem:[%s1146_s4 + $0xd0] sm:$0xff] %vm542_vm1, %v514_v54  ;;  %v700_v56 = vpop.f32.mrb[12].mxu1  ;;  %v449_v57 = vadd.f32 %v676_v55, %v980_v6  ;;  %v443_v59 = vpop.f32.mrb[13].mxu0 }
  0xf9   :  { %v529_v58 = vadd.f32 %v700_v56, %v980_v6  ;;  %v523_v60 = vpop.f32.mrb[13].mxu1  ;;  %v444_v61 = vadd.f32 %v980_v6, %v443_v59 }
  0xfa   :  { %v524_v62 = vadd.f32 %v980_v6, %v523_v60  ;;  %556 = vst.msk [vmem:[%s1146_s4 + $0x68] sm:$0xff] %vm542_vm1, %v449_v57 }
  0xfb   :  { %572 = vst.msk [vmem:[%s1146_s4 + $0xe8] sm:$0xff] %vm542_vm1, %v529_v58  ;;  %555 = vst.msk [vmem:[%s1146_s4 + $0x60] sm:$0xff] %vm542_vm1, %v444_v61  ;;  %v679_v63 = vpop.f32.mrb[14].mxu0 }
  0xfc   :  { %571 = vst.msk [vmem:[%s1146_s4 + $0xe0] sm:$0xff] %vm542_vm1, %v524_v62  ;;  %v703_v0 = vpop.f32.mrb[14].mxu1  ;;  %v459_v1 = vadd.f32 %v679_v63, %v980_v6  ;;  %v453_v3 = vpop.f32.mrb[15].mxu0 }
  0xfd   :  { %v539_v2 = vadd.f32 %v703_v0, %v980_v6  ;;  %v533_v4 = vpop.f32.mrb[15].mxu1  ;;  %v454_v5 = vadd.f32 %v980_v6, %v453_v3 }
  0xfe   :  { %v534_v7 = vadd.f32 %v980_v6, %v533_v4  ;;  %558 = vst.msk [vmem:[%s1146_s4 + $0x78] sm:$0xff] %vm542_vm1, %v459_v1 }
  0xff   :  { %574 = vst.msk [vmem:[%s1146_s4 + $0xf8] sm:$0xff] %vm542_vm1, %v539_v2  ;;  %557 = vst.msk [vmem:[%s1146_s4 + $0x70] sm:$0xff] %vm542_vm1, %v454_v5 }
 0x100   :  { %573 = vst.msk [vmem:[%s1146_s4 + $0xf0] sm:$0xff] %vm542_vm1, %v534_v7 }

</bundles_post_ra>
